<compile_context>
chip_gen: v5e
topology: v5e:2x2
jax: 0.10.0
libtpu: 0.0.40
codegen_flags: <defaults>
</compile_context>

<pallas_src>
import functools

import jax
import jax.numpy as jnp
from jax.experimental import pallas as pl
from jax.experimental.pallas import tpu as pltpu


# ---------------------------------------------------------------------------
# Kernel: per-row cross entropy with vocab-chunked online logsumexp.
# ---------------------------------------------------------------------------
def _ce_rows_kernel(logits_ref, targets_ref, loss_ref, *, n_rows, chunk_v):
    """loss[r] = logsumexp(logits[r, :]) - logits[r, target[r]]  (per row).

    Rows past n_rows (ragged tail of an uneven grid) and rows with target < 0
    (PyTorch ignore_index=-100) are written as 0.
    """
    block_n, vocab = logits_ref.shape
    t = targets_ref[...]                                     # (block_n, 1) int32

    # Finite init (not -inf) so garbage data in the ragged tail rows can never
    # produce NaN via (-inf) - (-inf); those rows are masked at the end anyway.
    m = jnp.full((block_n, 1), -1e30, dtype=jnp.float32)      # running max
    l = jnp.zeros((block_n, 1), dtype=jnp.float32)            # running sum exp(x - m)
    g = jnp.zeros((block_n, 1), dtype=jnp.float32)            # target logit accumulator

    def accumulate(x_native, col_ids, t_rel, m, l, g):
        x = x_native.astype(jnp.float32)                       # per-chunk cast in VMEM
        m_new = jnp.maximum(m, jnp.max(x, axis=-1, keepdims=True))
        l_new = l * jnp.exp(m - m_new) + jnp.sum(
            jnp.exp(x - m_new), axis=-1, keepdims=True)
        # Target appears in exactly one chunk over the whole vocab -> plain add.
        g_new = g + jnp.sum(jnp.where(col_ids == t_rel, x, 0.0),
                            axis=-1, keepdims=True)
        return m_new, l_new, g_new

    num_chunks = vocab // chunk_v
    rem = vocab - num_chunks * chunk_v

    if num_chunks > 0:
        # Hoisted lane iota (JAX doesn't CSE broadcasts); compare against
        # (t - chunk_start) so no per-chunk full-tile add is needed.
        col_local = jax.lax.broadcasted_iota(jnp.int32, (block_n, chunk_v), 1)

        def body(i, carry):
            m, l, g = carry
            start = pl.multiple_of(i * chunk_v, chunk_v)
            x_chunk = logits_ref[:, pl.ds(start, chunk_v)]
            return accumulate(x_chunk, col_local, t - start, m, l, g)

        m, l, g = jax.lax.fori_loop(0, num_chunks, body, (m, l, g))

    if rem > 0:  # ragged vocab tail (static slice; also the V <= chunk_v path)
        start = num_chunks * chunk_v
        x_chunk = logits_ref[:, start:vocab]
        col_rem = jax.lax.broadcasted_iota(jnp.int32, (block_n, rem), 1)
        m, l, g = accumulate(x_chunk, col_rem, t - start, m, l, g)

    loss = (m - g) + jnp.log(l)                                 # lse - target_logit

    row = pl.program_id(0) * block_n + jax.lax.broadcasted_iota(
        jnp.int32, (block_n, 1), 0)
    valid = (row < n_rows) & (t >= 0)        # ragged rows + ignore_index rows -> 0
    loss_ref[...] = jnp.where(valid, loss, 0.0)


# ---------------------------------------------------------------------------
# Sizing helpers (generation-gated VMEM budget, honest accounting).
# ---------------------------------------------------------------------------
def _vmem_capacity_bytes():
    try:
        info = pltpu.get_tpu_info()
        cap = getattr(info, "vmem_capacity_bytes", None)
        if cap:
            return int(cap)
    except Exception:
        pass
    return 64 * 1024 * 1024   # conservative: v7x has 64 MiB per TensorCore


def _round_up(x, m):
    return ((x + m - 1) // m) * m


def _choose_block_n(vocab, itemsize, chunk_v, budget_bytes):
    # Per-row VMEM bytes at one grid step:
    #   2 * vocab * itemsize   double-buffered native-dtype logits tile
    #   ~6 * chunk_v * 4       per-chunk f32 temporaries (cast/sub/exp/cmp/select)
    #                          plus the hoisted lane iota
    #   ~64                    (block_n,1) accumulators, targets/out double buffers
    per_row = 2 * vocab * itemsize + 6 * chunk_v * 4 + 64
    bn = budget_bytes // per_row
    return int(max(16, min(1024, (bn // 16) * 16)))


# ---------------------------------------------------------------------------
# Wrapper: unreduced per-row cross entropy via the Pallas kernel.
# ---------------------------------------------------------------------------
def cross_entropy_rows(logits, targets, block_n=None, chunk_v=None):
    """logits: (N, V) any float dtype (read natively; f32 math in-kernel).
    targets: (N,) int.  Returns (N,) float32 per-row losses; rows with
    target < 0 (PyTorch ignore_index=-100) return 0."""
    n_rows, vocab = logits.shape
    itemsize = jnp.dtype(logits.dtype).itemsize
    targets2d = targets.astype(jnp.int32).reshape(n_rows, 1)

    if chunk_v is None:
        chunk_v = min(1024, _round_up(vocab, 128))   # always a multiple of 128

    cap = _vmem_capacity_bytes()
    # ~45% of physical VMEM as working-set budget (<=56 MiB even on 128 MiB chips).
    budget = max(8 << 20, min(int(cap * 0.45), 56 << 20))

    if block_n is None:
        block_n = _choose_block_n(vocab, itemsize, chunk_v, budget)
        # Keep >= 2 (ideally >= 8) row blocks so v7x's two TensorCores both work.
        if n_rows >= 8 * 16:
            desired_blocks = 8
        elif n_rows >= 2 * 16:
            desired_blocks = 2
        else:
            desired_blocks = 1
        if desired_blocks > 1:
            cap_bn = max(16, (pl.cdiv(n_rows, desired_blocks) // 16) * 16)
            block_n = min(block_n, cap_bn)
        block_n = min(block_n, max(16, (n_rows // 16) * 16))

    # Tiny inputs: pad rows up to one 16-row tile (bf16 sublane packing tile).
    if n_rows < 16:
        pad = 16 - n_rows
        logits = jnp.pad(logits, ((0, pad), (0, 0)))
        targets2d = jnp.pad(targets2d, ((0, pad), (0, 0)), constant_values=-1)
        block_n = 16

    num_blocks = pl.cdiv(max(n_rows, 16), block_n)
    padded_rows = num_blocks * block_n

    est_step_bytes = block_n * (2 * vocab * itemsize + 6 * chunk_v * 4 + 64)
    vmem_limit = int(min(cap * 0.8, max(est_step_bytes + (16 << 20), 32 << 20)))

    out = pl.pallas_call(
        functools.partial(_ce_rows_kernel, n_rows=n_rows, chunk_v=chunk_v),
        out_shape=jax.ShapeDtypeStruct((padded_rows, 1), jnp.float32),
        grid=(num_blocks,),
        in_specs=[
            pl.BlockSpec((block_n, vocab), lambda i: (i, 0)),   # native dtype stream
            pl.BlockSpec((block_n, 1), lambda i: (i, 0)),
        ],
        out_specs=pl.BlockSpec((block_n, 1), lambda i: (i, 0)),
        compiler_params=pltpu.CompilerParams(
            dimension_semantics=("parallel",),      # row blocks shard across v7x's 2 TCs
            vmem_limit_bytes=vmem_limit,
        ),
        cost_estimate=pl.CostEstimate(
            flops=5 * n_rows * vocab,
            transcendentals=n_rows * vocab,
            bytes_accessed=n_rows * vocab * itemsize + n_rows * 4 + padded_rows * 4,
        ),
    )(logits, targets2d)
    return out[:n_rows, 0]


# ---------------------------------------------------------------------------
# NSP head (V = 2): plain XLA -- a Pallas kernel would waste 126/128 lanes.
# ---------------------------------------------------------------------------
def _ce_mean_xla(logits, targets):
    logits = logits.astype(jnp.float32)
    lse = jax.nn.logsumexp(logits, axis=-1)
    tgt = jnp.take_along_axis(
        logits, targets[:, None].astype(jnp.int32), axis=-1)[:, 0]
    return jnp.mean(lse - tgt)


# ---------------------------------------------------------------------------
# PretrainLoss.forward mirror.
# ---------------------------------------------------------------------------
def pretrain_loss(mlm_preds, mlm_targets, mlm_weights, nsp_preds, nsp_targets,
                  vocab_size):
    """Mirror of PretrainLoss.forward (nn.CrossEntropyLoss, default 'mean',
    default ignore_index=-100: targets < 0 are excluded from the mean)."""
    flat_logits = mlm_preds.reshape(-1, vocab_size)
    flat_targets = mlm_targets.reshape(-1)

    mlm_ce_rows = cross_entropy_rows(flat_logits, flat_targets)     # 0 for ignored rows
    num_valid = jnp.maximum(jnp.sum(flat_targets >= 0), 1).astype(jnp.float32)
    mlm_mean_ce = mlm_ce_rows.sum() / num_valid                      # 'mean' reduction

    # Faithful to the reference module: the scalar mean is broadcast against the
    # weights, summed, and normalized (reduces to scaling by w_sum/(w_sum+1e-8)).
    mlm_loss = (mlm_mean_ce * mlm_weights.reshape(-1, 1)).sum()
    mlm_loss = mlm_loss / (mlm_weights.sum() + 1e-08)

    nsp_loss = _ce_mean_xla(nsp_preds, nsp_targets)

    total_loss = mlm_loss + nsp_loss
    return total_loss, mlm_loss, nsp_loss


# ---------------------------------------------------------------------------
# Pure-JAX reference (including ignore_index semantics).
# ---------------------------------------------------------------------------
def _reference(mlm_preds, mlm_targets, mlm_weights, nsp_preds, nsp_targets,
               vocab_size):
    def ce_mean(logits, targets):
        logits = logits.astype(jnp.float32)
        logp = jax.nn.log_softmax(logits, axis=-1)
        valid = targets >= 0
        safe = jnp.where(valid, targets, 0).astype(jnp.int32)
        nll = -jnp.take_along_axis(logp, safe[:, None], axis=-1)[:, 0]
        nll = jnp.where(valid, nll, 0.0)
        return nll.sum() / jnp.maximum(valid.sum(), 1)

    mlm_mean = ce_mean(mlm_preds.reshape(-1, vocab_size), mlm_targets.reshape(-1))
    mlm_loss = (mlm_mean * mlm_weights.reshape(-1, 1)).sum() / (mlm_weights.sum() + 1e-08)
    nsp_loss = ce_mean(nsp_preds, nsp_targets)
    return mlm_loss + nsp_loss, mlm_loss, nsp_loss


if __name__ == "__main__":
    # Small shapes consistent with the module: batch=2, seq=8, vocab=32, 2 NSP classes.
    B, S, V = 2, 8, 32
    key = jax.random.PRNGKey(0)
    ks = jax.random.split(key, 9)

    mlm_preds = jax.random.normal(ks[0], (B, S, V), dtype=jnp.float32)
    mlm_targets = jax.random.randint(ks[1], (B, S), 0, V, dtype=jnp.int32)
    # Exercise PyTorch's default ignore_index=-100 on a couple of positions.
    mlm_targets = mlm_targets.at[0, 1].set(-100).at[1, 3].set(-100)
    mlm_weights = (jax.random.uniform(ks[2], (B, S)) > 0.5).astype(jnp.float32)
    nsp_preds = jax.random.normal(ks[3], (B, 2), dtype=jnp.float32)
    nsp_targets = jax.random.randint(ks[4], (B,), 0, 2, dtype=jnp.int32)

    loss_fn = jax.jit(pretrain_loss, static_argnums=(5,))
    total, mlm, nsp = jax.block_until_ready(
        loss_fn(mlm_preds, mlm_targets, mlm_weights, nsp_preds, nsp_targets, V))

    ref_total, ref_mlm, ref_nsp = _reference(
        mlm_preds, mlm_targets, mlm_weights, nsp_preds, nsp_targets, V)
    assert jnp.allclose(total, ref_total, atol=1e-5), (total, ref_total)
    assert jnp.allclose(mlm, ref_mlm, atol=1e-5), (mlm, ref_mlm)
    assert jnp.allclose(nsp, ref_nsp, atol=1e-5), (nsp, ref_nsp)

    # Native bf16 logits streamed straight from HBM + row count that does not
    # divide the row tile -> exercises the in-kernel ragged-row masking.
    n2, v2 = 18, 160
    x2 = jax.random.normal(ks[5], (n2, v2), dtype=jnp.bfloat16)
    t2 = jax.random.randint(ks[6], (n2,), 0, v2, dtype=jnp.int32)
    got2 = jax.block_until_ready(cross_entropy_rows(x2, t2))
    x2f = x2.astype(jnp.float32)
    ref2 = jax.nn.logsumexp(x2f, axis=-1) - jnp.take_along_axis(
        x2f, t2[:, None], axis=-1)[:, 0]
    assert jnp.allclose(got2, ref2, atol=1e-4, rtol=1e-4), (got2, ref2)

    # Exercise the chunked online-logsumexp fori_loop (2 full 128-lane chunks),
    # the ragged 32-lane vocab remainder, and a multi-block ragged row grid.
    n3, v3 = 40, 288
    x3 = jax.random.normal(ks[7], (n3, v3), dtype=jnp.float32)
    t3 = jax.random.randint(ks[8], (n3,), 0, v3, dtype=jnp.int32)
    got3 = jax.block_until_ready(cross_entropy_rows(x3, t3, chunk_v=128))
    ref3 = jax.nn.logsumexp(x3, axis=-1) - jnp.take_along_axis(
        x3, t3[:, None], axis=-1)[:, 0]
    assert jnp.allclose(got3, ref3, atol=1e-5, rtol=1e-5), (got3, ref3)

    print("KERNEL_OK")
</pallas_src>

<mosaic_0001>
module attributes {stable_mosaic.version = 11 : i64} {
  func.func @_ce_rows_kernel(%arg0: i32, %arg1: memref<16x32xf32, #tpu.memory_space<vmem>>, %arg2: memref<16x1xi32, #tpu.memory_space<vmem>>, %arg3: memref<16x1xf32, #tpu.memory_space<vmem>>) attributes {dimension_semantics = [#tpu.dimension_semantics<parallel>], iteration_bounds = array<i64: 1>, scalar_prefetch = 0 : i64, scratch_operands = 0 : i64, tpu.core_type = #tpu.core_type<tc>, window_params = [{transform_indices = @transform_0, window_bounds = array<i64: 16, 32>}, {transform_indices = @transform_1, window_bounds = array<i64: 16, 1>}, {transform_indices = @transform_2, window_bounds = array<i64: 16, 1>}]} {
    %c0 = arith.constant 0 : index
    %c0_0 = arith.constant 0 : index
    %0 = vector.load %arg2[%c0, %c0_0] : memref<16x1xi32, #tpu.memory_space<vmem>>, vector<16x1xi32>
    %cst = arith.constant -1.000000e+30 : f32
    %1 = vector.broadcast %cst : f32 to vector<16x1xf32>
    %cst_1 = arith.constant 0.000000e+00 : f32
    %2 = vector.broadcast %cst_1 : f32 to vector<16x1xf32>
    %cst_2 = arith.constant 0.000000e+00 : f32
    %3 = vector.broadcast %cst_2 : f32 to vector<16x1xf32>
    %c0_3 = arith.constant 0 : index
    %c0_4 = arith.constant 0 : index
    %4 = vector.load %arg1[%c0_3, %c0_4] : memref<16x32xf32, #tpu.memory_space<vmem>>, vector<16x32xf32>
    %5 = tpu.iota {dimensions = array<i32: 1>} : vector<16x32xi32>
    %c0_i32 = arith.constant 0 : i32
    %6 = vector.broadcast %c0_i32 : i32 to vector<16x1xi32>
    %7 = arith.subi %0, %6 : vector<16x1xi32>
    %cst_5 = arith.constant dense<0xFF800000> : vector<16xf32>
    %8 = vector.multi_reduction <maximumf>, %4, %cst_5 [1] : vector<16x32xf32> to vector<16xf32>
    %9 = vector.shape_cast %8 : vector<16xf32> to vector<16x1xf32>
    %10 = arith.maximumf %1, %9 : vector<16x1xf32>
    %11 = arith.subf %1, %10 : vector<16x1xf32>
    %12 = math.exp %11 : vector<16x1xf32>
    %13 = arith.mulf %2, %12 : vector<16x1xf32>
    %14 = vector.broadcast %10 : vector<16x1xf32> to vector<16x32xf32>
    %15 = arith.subf %4, %14 : vector<16x32xf32>
    %16 = math.exp %15 : vector<16x32xf32>
    %cst_6 = arith.constant dense<0.000000e+00> : vector<16xf32>
    %17 = vector.multi_reduction <add>, %16, %cst_6 [1] : vector<16x32xf32> to vector<16xf32>
    %18 = vector.shape_cast %17 : vector<16xf32> to vector<16x1xf32>
    %19 = arith.addf %13, %18 : vector<16x1xf32>
    %20 = vector.broadcast %7 : vector<16x1xi32> to vector<16x32xi32>
    %21 = arith.cmpi eq, %5, %20 : vector<16x32xi32>
    %cst_7 = arith.constant 0.000000e+00 : f32
    %22 = vector.broadcast %cst_7 : f32 to vector<16x32xf32>
    %23 = arith.select %21, %4, %22 : vector<16x32xi1>, vector<16x32xf32>
    %cst_8 = arith.constant dense<0.000000e+00> : vector<16xf32>
    %24 = vector.multi_reduction <add>, %23, %cst_8 [1] : vector<16x32xf32> to vector<16xf32>
    %25 = vector.shape_cast %24 : vector<16xf32> to vector<16x1xf32>
    %26 = arith.addf %3, %25 : vector<16x1xf32>
    %27 = arith.subf %10, %26 : vector<16x1xf32>
    %28 = math.log %19 : vector<16x1xf32>
    %29 = arith.addf %27, %28 : vector<16x1xf32>
    %c16_i32 = arith.constant 16 : i32
    %30 = arith.muli %arg0, %c16_i32 : i32
    %31 = tpu.iota {dimensions = array<i32: 0>} : vector<16x1xi32>
    %32 = vector.broadcast %30 : i32 to vector<16x1xi32>
    %33 = arith.addi %32, %31 : vector<16x1xi32>
    %c16_i32_9 = arith.constant 16 : i32
    %34 = vector.broadcast %c16_i32_9 : i32 to vector<16x1xi32>
    %35 = arith.cmpi slt, %33, %34 : vector<16x1xi32>
    %c0_i32_10 = arith.constant 0 : i32
    %36 = vector.broadcast %c0_i32_10 : i32 to vector<16x1xi32>
    %37 = arith.cmpi sge, %0, %36 : vector<16x1xi32>
    %38 = arith.andi %35, %37 : vector<16x1xi1>
    %cst_11 = arith.constant 0.000000e+00 : f32
    %39 = vector.broadcast %cst_11 : f32 to vector<16x1xf32>
    %40 = arith.select %38, %29, %39 : vector<16x1xi1>, vector<16x1xf32>
    %c0_12 = arith.constant 0 : index
    %c0_13 = arith.constant 0 : index
    %41 = vector.load %arg3[%c0_12, %c0_13] : memref<16x1xf32, #tpu.memory_space<vmem>>, vector<16x1xf32>
    tpu.vector_store %arg3[%c0_12, %c0_13], %40 {strides = array<i32>} : memref<16x1xf32, #tpu.memory_space<vmem>>, vector<16x1xf32>,
    return
  }
  func.func @transform_0(%arg0: i32) -> (i32, i32) {
    %c0_i32 = arith.constant 0 : i32
    %c0_i32_0 = arith.constant 0 : i32
    return %arg0, %c0_i32 : i32, i32
  }
  func.func @transform_1(%arg0: i32) -> (i32, i32) {
    %c0_i32 = arith.constant 0 : i32
    %c0_i32_0 = arith.constant 0 : i32
    return %arg0, %c0_i32 : i32, i32
  }
  func.func @transform_2(%arg0: i32) -> (i32, i32) {
    %c0_i32 = arith.constant 0 : i32
    %c0_i32_0 = arith.constant 0 : i32
    return %arg0, %c0_i32 : i32, i32
  }
}

</mosaic_0001>

<bundles_post_ra>
// kernel: pretrain_loss.1
= control target key start
LH: loop header
LB: loop body
LE: loop exit
PB: predicated region body
PF: predicated region fallthrough
CT: control target
= control target key end

     0   :  { %vm17_vm0 = vcmask 261120   ;;  %v111_v0 = vmov 0   ;;  %v15_v7 = vlaneseq  ;;  %vm89_vm4 = vcmask 7168   ;;  %s159_s1 = inlined_call_operand.vmem [shape: s32[16,1], index: 1, kind: input, shape index: {}]   ;;  %s160_s0 = inlined_call_operand.vmem [shape: f32[16,32], index: 0, kind: input, shape index: {}]   ;;  %s161_s2 = inlined_call_operand.vmem [shape: f32[16,1], index: 2, kind: output, shape index: {}]  }
   0x1   :  { %97 = vset.pattern.permute.xlu1 %v111_v0  ;;  %v130_v1 = vld [vmem:[%s159_s1] sm:$0xff]  ;;  %98 = vset.pattern.permute.xlu0 %v111_v0  ;;  %v14_v4 = vld [vmem:[%s160_s0 + $0x8] sm:$0xff] }
   0x2   :  { %v13_v2 = vld [vmem:[%s160_s0] sm:$0xff]  ;;  %49 = vperm.xlu1 %97, %v130_v1   ;;  %v143_v5 = vld [vmem:[%s159_s1 + $0x8] sm:$0xff]  ;;  %v21_v6 = vsel %vm17_vm0, %v14_v4, -inf  ;;  %v16_v8 = vand.u32 127, %v15_v7  ;;  %vm83_vm3 = vcmp.ge.s32.totalorder %v130_v1, 0 }
   0x3   :  { %v18_v3 = vsel %vm17_vm0, %v13_v2, -inf  ;;  %vm84_vm5 = vcmp.ge.s32.totalorder %v143_v5, 0 }
   0x4   :  { %19 = vmax.xlane.f32.xlu0 %v18_v3 }
   0xa   :  { %52 = vperm.xlu1 %97, %v143_v5  }
   0xc   :  { %22 = vmax.xlane.f32.xlu0 %v21_v6 }
  0x74   :  { %v50_v9 = vpop.permute.xlu1 %49 }
  0x75   :  { %vm54_vm1 = vcmp.eq.s32.totalorder %v16_v8, %v50_v9 }
  0x76   :  { %v56_v11 = vsel %vm54_vm1, %v13_v2, 0.0 }
  0x77   :  { %v20_v10 = vpop.xlane.xlu0 %19  ;;  %v58_v13 = vsel %vm17_vm0, %v56_v11, 0.0 }
  0x78   :  { %v24_v12 = vmax.f32 %v20_v10, -1e+30  ;;  %59 = vadd.xlane.f32.xlu0 %v58_v13 }
  0x7a   :  { %v34_v14 = vsub.f32 %v13_v2, %v24_v12  ;;  %v26_v27 = vsub.f32 -1e+30, %v24_v12 }
  0x7c   :  { %v36_v15 = vmul.f32 1.442695, %v34_v14  ;;  %v53_v16 = vpop.permute.xlu1 %52  ;;  %v28_v28 = vmul.f32 1.442695, %v26_v27 }
  0x7d   :  { %vm55_vm2 = vcmp.eq.s32.totalorder %v16_v8, %v53_v16 }
  0x7e   :  { %99 = vpow2.f32 %v36_v15  ;;  %v57_v18 = vsel %vm55_vm2, %v14_v4, 0.0 }
  0x7f   :  { %v23_v17 = vpop.xlane.xlu0 %22  ;;  %v61_v20 = vsel %vm17_vm0, %v57_v18, 0.0 }
  0x80   :  { %v25_v19 = vmax.f32 %v23_v17, -1e+30  ;;  %62 = vadd.xlane.f32.xlu1 %v61_v20 }
  0x82   :  { %v35_v21 = vsub.f32 %v14_v4, %v25_v19  ;;  %v27_v29 = vsub.f32 -1e+30, %v25_v19 }
  0x84   :  { %v100_v22 = vpop.eup %99  ;;  %v38_v23 = vmul.f32 1.442695, %v35_v21  ;;  %v30_v30 = vmul.f32 1.442695, %v27_v29 }
  0x85   :  { %v40_v24 = vsel %vm17_vm0, %v100_v22, 0.0 }
  0x86   :  { %101 = vpow2.f32 %v38_v23  ;;  %41 = vadd.xlane.f32.xlu2 %v40_v24 }
  0x87   :  { %103 = vpow2.f32 %v28_v28 }
  0x88   :  { %105 = vpow2.f32 %v30_v30 }
  0x8c   :  { %v102_v25 = vpop.eup %101 }
  0x8d   :  { %v43_v26 = vsel %vm17_vm0, %v102_v25, 0.0  ;;  %v104_v31 = vpop.eup %103 }
  0x8e   :  { %44 = vadd.xlane.f32.xlu2 %v43_v26  ;;  %v32_v32 = vmul.f32 0.0, %v104_v31  ;;  %v106_v35 = vpop.eup %105 }
  0x8f   :  { %v33_v37 = vmul.f32 0.0, %v106_v35 }
  0xeb   :  { %v60_v36 = vpop.xlane.xlu0 %59 }
  0xec   :  { %v66_v41 = vsub.f32 %v24_v12, %v60_v36 }
  0xf3   :  { %v63_v45 = vpop.xlane.xlu1 %62 }
  0xf4   :  { %v67_v47 = vsub.f32 %v25_v19, %v63_v45 }
  0xf9   :  { %v42_v33 = vpop.xlane.xlu2 %41 }
  0xfa   :  { %v46_v34 = vadd.f32 %v42_v33, %v32_v32 }
  0xfc   :  { %107 = vlog2.f32 %v46_v34 }
 0x101   :  { %v45_v38 = vpop.xlane.xlu2 %44 }
 0x102   :  { %v108_v39 = vpop.eup %107  ;;  %v47_v40 = vadd.f32 %v45_v38, %v33_v37 }
 0x103   :  { %v69_v42 = vmul.f32 0.6931472, %v108_v39 }
 0x104   :  { %109 = vlog2.f32 %v47_v40 }
 0x105   :  { %v72_v43 = vadd.f32 %v69_v42, %v66_v41 }
 0x107   :  { %v87_v44 = vsel %vm83_vm3, %v72_v43, 0.0 }
 0x108   :  { %90 = vst.msk [vmem:[%s161_s2] sm:$0xff] %vm89_vm4, %v87_v44 }
 0x10a   :  { %v110_v46 = vpop.eup %109 }
 0x10b   :  { %v71_v48 = vmul.f32 0.6931472, %v110_v46 }
 0x10d   :  { %v73_v49 = vadd.f32 %v71_v48, %v67_v47 }
 0x10f   :  { %v88_v50 = vsel %vm84_vm5, %v73_v49, 0.0 }
 0x110   :  { %91 = vst.msk [vmem:[%s161_s2 + $0x8] sm:$0xff] %vm89_vm4, %v88_v50 }

</bundles_post_ra>
